<compile_context>
chip_gen: v7x
topology: tpu7x:2x2x1
jax: 0.10.0
libtpu: 0.0.40
codegen_flags: <defaults>
</compile_context>

<pallas_src>
import jax
import jax.numpy as jnp
from jax.experimental import pallas as pl
from jax.experimental.pallas import tpu as pltpu

_LANE = 128
_SUBLANE = 8


def _round_up(x, m):
    return (x + m - 1) // m * m


def _vmem_capacity_bytes():
    try:
        return int(pltpu.get_tpu_info().vmem_capacity_bytes)
    except Exception:
        return 64 * 1024 * 1024  # conservative (v7x-sized) fallback


# ---------------------------------------------------------------------------
# Kernels
# ---------------------------------------------------------------------------
def _fused_kernel(x_ref, w1_ref, b1_ref, w2_ref, b2_ref, o_ref):
    """Full weights VMEM-resident; one row tile of x / out per grid step."""
    x = x_ref[...]                                              # native dtype
    h = jnp.dot(x.astype(w1_ref.dtype), w1_ref[...],
                preferred_element_type=jnp.float32)             # [TN, Hp] f32 (MXU)
    z = jnp.maximum(h + b1_ref[...], 0.0)                       # bias + ReLU (VPU)
    y = jnp.dot(z.astype(w2_ref.dtype), w2_ref[...],
                preferred_element_type=jnp.float32)             # [TN, Dp] f32 (MXU)
    o_ref[...] = (x.astype(jnp.float32) + y + b2_ref[...]).astype(o_ref.dtype)


def _htiled_kernel(x_ref, w1_ref, b1_ref, w2_ref, b2_ref, o_ref, acc_ref):
    """Fallback when W1/W2 don't fit VMEM: hidden dim tiled on grid axis 1."""
    hk = pl.program_id(1)

    @pl.when(hk == 0)
    def _():
        acc_ref[...] = jnp.zeros_like(acc_ref)

    h = jnp.dot(x_ref[...].astype(w1_ref.dtype), w1_ref[...],
                preferred_element_type=jnp.float32)
    z = jnp.maximum(h + b1_ref[...], 0.0)
    acc_ref[...] += jnp.dot(z.astype(w2_ref.dtype), w2_ref[...],
                            preferred_element_type=jnp.float32)

    @pl.when(hk == pl.num_programs(1) - 1)
    def _():
        o_ref[...] = (x_ref[...].astype(jnp.float32) + acc_ref[...]
                      + b2_ref[...]).astype(o_ref.dtype)


# ---------------------------------------------------------------------------
# Tile selection (VMEM accounting)
# ---------------------------------------------------------------------------
def _pick_tile_n(n, dp, hp, x_bytes, out_bytes, *, vmem_budget, weight_buffers,
                 sub, max_tile=1024):
    """Largest row tile whose resident footprint (weights + pipelined x/out buffers +
    in-kernel intermediates) fits the budget.  Returns (tile_n, fits)."""
    weight_bytes = weight_buffers * (
        2 * dp * hp * 2                                    # W1 + W2 (bf16)
        + _SUBLANE * (hp + dp) * 4)                        # b1 + b2 (f32, sublane-padded)
    per_row = (
        2 * dp * x_bytes + 2 * dp * out_bytes              # double-buffered x / out tiles
        + dp * 2 + hp * 4 + hp * 2                         # bf16 x copy, f32 h/z, bf16 z
        + dp * 4 + dp * 4)                                 # f32 2nd-matmul result + sum
    tile = min(_round_up(n, sub), max_tile)
    while tile > sub and weight_bytes + tile * per_row > vmem_budget:
        tile = max(sub, _round_up(tile // 2, sub))
    fits = weight_bytes + tile * per_row <= vmem_budget
    return tile, fits


def _pick_h_tiling(n, dp, hp, x_bytes, out_bytes, *, vmem_budget, sub):
    """Fallback sizing when the full weights don't fit: tile the hidden dim."""
    tile_n = min(_round_up(n, sub), 256)
    tile_h = min(_round_up(hp, _LANE), 2048)

    def footprint(tn, th):
        w = 2 * (2 * dp * th * 2 + _SUBLANE * th * 4)      # W1/W2/b1 tiles, double-buffered
        w += _SUBLANE * dp * 4                             # b2
        row = (2 * dp * x_bytes + 2 * dp * out_bytes       # pipelined x / out tiles
               + dp * 4                                    # f32 accumulator scratch
               + dp * 2 + th * 4 + th * 2 + dp * 4)        # in-kernel intermediates
        return w + tn * row

    while footprint(tile_n, tile_h) > vmem_budget and (tile_h > _LANE or tile_n > sub):
        if tile_h > _LANE:
            tile_h = max(_LANE, _round_up(tile_h // 2, _LANE))
        else:
            tile_n = max(sub, _round_up(tile_n // 2, sub))
    return tile_n, tile_h


# ---------------------------------------------------------------------------
# Wrapper
# ---------------------------------------------------------------------------
def linear_residual(x, w1, b1, w2, b2):
    """x: [N, D], w1: [D, H], b1: [H], w2: [H, D], b2: [D] -> [N, D] in x.dtype."""
    N, D = x.shape
    H = w1.shape[1]
    out_dtype = x.dtype
    x_isz = jnp.dtype(x.dtype).itemsize
    out_isz = jnp.dtype(out_dtype).itemsize
    sub = max(_SUBLANE, 32 // max(x_isz, 1))        # 8 for f32, 16 for bf16, 32 for int8

    Dp = _round_up(D, _LANE)                        # lane-dense feature dims
    Hp = _round_up(H, _LANE)
    Np = _round_up(N, sub)                          # only pad rows to a sublane multiple

    vmem_capacity = min(_vmem_capacity_bytes(), 128 * 1024 * 1024)
    vmem_limit = (vmem_capacity * 7) // 8           # ~56 MiB on v7x, ~112 MiB on v5e/v6e
    vmem_budget = int(vmem_limit * 0.85)            # headroom for Mosaic internal scratch

    # Zero-pad features: padded rows/cols contribute exactly 0 to both contractions.
    x_p = x if (Np == N and Dp == D) else jnp.pad(x, ((0, Np - N), (0, Dp - D)))
    w1_p = jnp.pad(w1, ((0, Dp - D), (0, Hp - H))).astype(jnp.bfloat16)
    w2_p = jnp.pad(w2, ((0, Hp - H), (0, Dp - D))).astype(jnp.bfloat16)
    b1_p = jnp.pad(b1, (0, Hp - H)).astype(jnp.float32).reshape(1, Hp)
    b2_p = jnp.pad(b2, (0, Dp - D)).astype(jnp.float32).reshape(1, Dp)

    cost = pl.CostEstimate(
        flops=int(4 * Np * Dp * Hp), transcendentals=0,
        bytes_accessed=int(Np * Dp * (x_isz + out_isz)
                           + (w1_p.size + w2_p.size) * 2
                           + (b1_p.size + b2_p.size) * 4))

    def run(single_buffer_weights):
        wb = 1 if single_buffer_weights else 2
        wmode = dict(pipeline_mode=pl.Buffered(1)) if single_buffer_weights else {}
        tile_n, fits = _pick_tile_n(Np, Dp, Hp, x_isz, out_isz, vmem_budget=vmem_budget,
                                    weight_buffers=wb, sub=sub)
        if fits:
            return pl.pallas_call(
                _fused_kernel,
                out_shape=jax.ShapeDtypeStruct((Np, Dp), out_dtype),
                grid=(pl.cdiv(Np, tile_n),),
                in_specs=[
                    pl.BlockSpec((tile_n, Dp), lambda i: (i, 0)),        # x (pipelined)
                    pl.BlockSpec((Dp, Hp), lambda i: (0, 0), **wmode),   # W1 (resident)
                    pl.BlockSpec((1, Hp), lambda i: (0, 0), **wmode),    # b1
                    pl.BlockSpec((Hp, Dp), lambda i: (0, 0), **wmode),   # W2
                    pl.BlockSpec((1, Dp), lambda i: (0, 0), **wmode),    # b2
                ],
                out_specs=pl.BlockSpec((tile_n, Dp), lambda i: (i, 0)),
                compiler_params=pltpu.CompilerParams(
                    # TODO(synk): use pltpu.CORE_PARALLEL here on v7x (2 TCs/chip) once the
                    # chip generation can be detected reliably; "parallel" is safe everywhere.
                    dimension_semantics=("parallel",),
                    vmem_limit_bytes=int(vmem_limit)),
                cost_estimate=cost,
            )(x_p, w1_p, b1_p, w2_p, b2_p)

        # Weights exceed the VMEM budget: tile the hidden dim with an f32 accumulator.
        tile_n, tile_h = _pick_h_tiling(Np, Dp, Hp, x_isz, out_isz,
                                        vmem_budget=vmem_budget, sub=sub)
        Hp2 = _round_up(Hp, tile_h)          # keep every h tile zero-padded (exact sum)
        w1_h = jnp.pad(w1_p, ((0, 0), (0, Hp2 - Hp)))
        w2_h = jnp.pad(w2_p, ((0, Hp2 - Hp), (0, 0)))
        b1_h = jnp.pad(b1_p, ((0, 0), (0, Hp2 - Hp)))
        return pl.pallas_call(
            _htiled_kernel,
            out_shape=jax.ShapeDtypeStruct((Np, Dp), out_dtype),
            grid=(pl.cdiv(Np, tile_n), Hp2 // tile_h),
            in_specs=[
                pl.BlockSpec((tile_n, Dp), lambda i, k: (i, 0)),   # x (resident across k)
                pl.BlockSpec((Dp, tile_h), lambda i, k: (0, k)),   # W1 column tile
                pl.BlockSpec((1, tile_h), lambda i, k: (0, k)),    # b1 tile
                pl.BlockSpec((tile_h, Dp), lambda i, k: (k, 0)),   # W2 row tile
                pl.BlockSpec((1, Dp), lambda i, k: (0, 0)),        # b2
            ],
            out_specs=pl.BlockSpec((tile_n, Dp), lambda i, k: (i, 0)),
            scratch_shapes=[pltpu.VMEM((tile_n, Dp), jnp.float32)],
            compiler_params=pltpu.CompilerParams(
                dimension_semantics=("parallel", "arbitrary"),
                vmem_limit_bytes=int(vmem_limit)),
            cost_estimate=cost,
        )(x_p, w1_h, b1_h, w2_h, b2_p)

    try:
        out_p = run(single_buffer_weights=True)
    except Exception:
        # pl.Buffered(1) unsupported on this jax build (or too tight): rebuild with the
        # default double-buffered weights; the tile picker accounts for the 2x footprint.
        out_p = run(single_buffer_weights=False)

    if Np == N and Dp == D:
        return out_p
    return out_p[:N, :D]


if __name__ == "__main__":
    # Shapes implied by the module's forward: x is [N, D]; hidden dim H.
    N, D, H = 8, 32, 64

    key = jax.random.PRNGKey(0)
    kx, k1, kb1, k2, kb2 = jax.random.split(key, 5)

    x = jax.random.normal(kx, (N, D), dtype=jnp.float32)

    # PyTorch nn.Linear stores [out, in]; we keep [in, out] so the kernel does x @ W —
    # same math as the module's forward.
    w1 = jax.random.normal(k1, (D, H), dtype=jnp.float32) * (1.0 / jnp.sqrt(D))
    b1 = jax.random.normal(kb1, (H,), dtype=jnp.float32) * 0.01
    w2 = jax.random.normal(k2, (H, D), dtype=jnp.float32) * (1.0 / jnp.sqrt(H))
    b2 = jax.random.normal(kb2, (D,), dtype=jnp.float32) * 0.01

    out = jax.block_until_ready(linear_residual(x, w1, b1, w2, b2))
    assert out.shape == (N, D)
    assert out.dtype == x.dtype

    # Reference with the same bf16 operand quantization as the kernel's MXU path.
    xb, w1b, w2b = (a.astype(jnp.bfloat16) for a in (x, w1, w2))
    z = jnp.maximum(jnp.dot(xb, w1b, preferred_element_type=jnp.float32) + b1, 0.0)
    ref_bf16 = x + jnp.dot(z.astype(jnp.bfloat16), w2b,
                           preferred_element_type=jnp.float32) + b2
    assert jnp.allclose(out, ref_bf16, atol=1e-2, rtol=1e-2)

    # Full-f32 reference (tolerance loosened because matmul operands are bf16 in-kernel).
    ref_f32 = x + (jnp.maximum(x @ w1 + b1, 0.0) @ w2 + b2)
    assert jnp.allclose(out, ref_f32, atol=5e-2, rtol=5e-2)

    print("KERNEL_OK")
</pallas_src>

<mosaic_0001>
module attributes {stable_mosaic.version = 11 : i64} {
  func.func @_fused_kernel(%arg0: i32, %arg1: memref<8x128xf32, #tpu.memory_space<vmem>>, %arg2: memref<128x128xbf16, #tpu.memory_space<vmem>>, %arg3: memref<1x128xf32, #tpu.memory_space<vmem>>, %arg4: memref<128x128xbf16, #tpu.memory_space<vmem>>, %arg5: memref<1x128xf32, #tpu.memory_space<vmem>>, %arg6: memref<8x128xf32, #tpu.memory_space<vmem>>) attributes {dimension_semantics = [#tpu.dimension_semantics<parallel>], iteration_bounds = array<i64: 1>, scalar_prefetch = 0 : i64, scratch_operands = 0 : i64, tpu.core_type = #tpu.core_type<tc>, window_params = [{transform_indices = @transform_0, window_bounds = array<i64: 8, 128>}, {pipeline_mode = #tpu.pipeline_mode<synchronous>, transform_indices = @transform_1, window_bounds = array<i64: 128, 128>}, {pipeline_mode = #tpu.pipeline_mode<synchronous>, transform_indices = @transform_2, window_bounds = array<i64: 1, 128>}, {pipeline_mode = #tpu.pipeline_mode<synchronous>, transform_indices = @transform_3, window_bounds = array<i64: 128, 128>}, {pipeline_mode = #tpu.pipeline_mode<synchronous>, transform_indices = @transform_4, window_bounds = array<i64: 1, 128>}, {transform_indices = @transform_5, window_bounds = array<i64: 8, 128>}]} {
    %c0 = arith.constant 0 : index
    %c0_0 = arith.constant 0 : index
    %0 = vector.load %arg1[%c0, %c0_0] : memref<8x128xf32, #tpu.memory_space<vmem>>, vector<8x128xf32>
    %1 = arith.truncf %0 : vector<8x128xf32> to vector<8x128xbf16>
    %c0_1 = arith.constant 0 : index
    %c0_2 = arith.constant 0 : index
    %2 = vector.load %arg2[%c0_1, %c0_2] : memref<128x128xbf16, #tpu.memory_space<vmem>>, vector<128x128xbf16>
    %cst = arith.constant dense<0.000000e+00> : vector<8x128xf32>
    %3 = tpu.matmul %1, %2, %cst {dimension_numbers = #tpu.dot_dimension_numbers<[1], [0], [0], [1], [0, 0, 1, 1], [], []>} : vector<8x128xbf16>, vector<128x128xbf16>, vector<8x128xf32> -> vector<8x128xf32>
    %c0_3 = arith.constant 0 : index
    %c0_4 = arith.constant 0 : index
    %4 = vector.load %arg3[%c0_3, %c0_4] : memref<1x128xf32, #tpu.memory_space<vmem>>, vector<1x128xf32>
    %5 = vector.broadcast %4 : vector<1x128xf32> to vector<8x128xf32>
    %6 = arith.addf %3, %5 : vector<8x128xf32>
    %cst_5 = arith.constant 0.000000e+00 : f32
    %7 = vector.broadcast %cst_5 : f32 to vector<8x128xf32>
    %8 = arith.maximumf %6, %7 : vector<8x128xf32>
    %9 = arith.truncf %8 : vector<8x128xf32> to vector<8x128xbf16>
    %c0_6 = arith.constant 0 : index
    %c0_7 = arith.constant 0 : index
    %10 = vector.load %arg4[%c0_6, %c0_7] : memref<128x128xbf16, #tpu.memory_space<vmem>>, vector<128x128xbf16>
    %cst_8 = arith.constant dense<0.000000e+00> : vector<8x128xf32>
    %11 = tpu.matmul %9, %10, %cst_8 {dimension_numbers = #tpu.dot_dimension_numbers<[1], [0], [0], [1], [0, 0, 1, 1], [], []>} : vector<8x128xbf16>, vector<128x128xbf16>, vector<8x128xf32> -> vector<8x128xf32>
    %12 = arith.addf %0, %11 : vector<8x128xf32>
    %c0_9 = arith.constant 0 : index
    %c0_10 = arith.constant 0 : index
    %13 = vector.load %arg5[%c0_9, %c0_10] : memref<1x128xf32, #tpu.memory_space<vmem>>, vector<1x128xf32>
    %14 = vector.broadcast %13 : vector<1x128xf32> to vector<8x128xf32>
    %15 = arith.addf %12, %14 : vector<8x128xf32>
    %c0_11 = arith.constant 0 : index
    %c0_12 = arith.constant 0 : index
    %16 = vector.load %arg6[%c0_11, %c0_12] : memref<8x128xf32, #tpu.memory_space<vmem>>, vector<8x128xf32>
    tpu.vector_store %arg6[%c0_11, %c0_12], %15 {strides = array<i32>} : memref<8x128xf32, #tpu.memory_space<vmem>>, vector<8x128xf32>,
    return
  }
  func.func @transform_0(%arg0: i32) -> (i32, i32) {
    %c0_i32 = arith.constant 0 : i32
    %c0_i32_0 = arith.constant 0 : i32
    return %arg0, %c0_i32 : i32, i32
  }
  func.func @transform_1(%arg0: i32) -> (i32, i32) {
    %c0_i32 = arith.constant 0 : i32
    %c0_i32_0 = arith.constant 0 : i32
    %c0_i32_1 = arith.constant 0 : i32
    return %c0_i32, %c0_i32_0 : i32, i32
  }
  func.func @transform_2(%arg0: i32) -> (i32, i32) {
    %c0_i32 = arith.constant 0 : i32
    %c0_i32_0 = arith.constant 0 : i32
    %c0_i32_1 = arith.constant 0 : i32
    return %c0_i32, %c0_i32_0 : i32, i32
  }
  func.func @transform_3(%arg0: i32) -> (i32, i32) {
    %c0_i32 = arith.constant 0 : i32
    %c0_i32_0 = arith.constant 0 : i32
    %c0_i32_1 = arith.constant 0 : i32
    return %c0_i32, %c0_i32_0 : i32, i32
  }
  func.func @transform_4(%arg0: i32) -> (i32, i32) {
    %c0_i32 = arith.constant 0 : i32
    %c0_i32_0 = arith.constant 0 : i32
    %c0_i32_1 = arith.constant 0 : i32
    return %c0_i32, %c0_i32_0 : i32, i32
  }
  func.func @transform_5(%arg0: i32) -> (i32, i32) {
    %c0_i32 = arith.constant 0 : i32
    %c0_i32_0 = arith.constant 0 : i32
    return %arg0, %c0_i32 : i32, i32
  }
}

module attributes {stable_mosaic.version = 11 : i64} {
  func.func @_fused_kernel(%arg0: i32, %arg1: memref<8x128xf32, #tpu.memory_space<vmem>>, %arg2: memref<128x128xbf16, #tpu.memory_space<vmem>>, %arg3: memref<1x128xf32, #tpu.memory_space<vmem>>, %arg4: memref<128x128xbf16, #tpu.memory_space<vmem>>, %arg5: memref<1x128xf32, #tpu.memory_space<vmem>>, %arg6: memref<8x128xf32, #tpu.memory_space<vmem>>) attributes {dimension_semantics = [#tpu.dimension_semantics<parallel>], iteration_bounds = array<i64: 1>, scalar_prefetch = 0 : i64, scratch_operands = 0 : i64, tpu.core_type = #tpu.core_type<tc>, window_params = [{transform_indices = @transform_0, window_bounds = array<i64: 8, 128>}, {pipeline_mode = #tpu.pipeline_mode<synchronous>, transform_indices = @transform_1, window_bounds = array<i64: 128, 128>}, {pipeline_mode = #tpu.pipeline_mode<synchronous>, transform_indices = @transform_2, window_bounds = array<i64: 1, 128>}, {pipeline_mode = #tpu.pipeline_mode<synchronous>, transform_indices = @transform_3, window_bounds = array<i64: 128, 128>}, {pipeline_mode = #tpu.pipeline_mode<synchronous>, transform_indices = @transform_4, window_bounds = array<i64: 1, 128>}, {transform_indices = @transform_5, window_bounds = array<i64: 8, 128>}]} {
    %c0 = arith.constant 0 : index
    %c0_0 = arith.constant 0 : index
    %0 = vector.load %arg1[%c0, %c0_0] : memref<8x128xf32, #tpu.memory_space<vmem>>, vector<8x128xf32>
    %1 = arith.truncf %0 : vector<8x128xf32> to vector<8x128xbf16>
    %c0_1 = arith.constant 0 : index
    %c0_2 = arith.constant 0 : index
    %2 = vector.load %arg2[%c0_1, %c0_2] : memref<128x128xbf16, #tpu.memory_space<vmem>>, vector<128x128xbf16>
    %cst = arith.constant dense<0.000000e+00> : vector<8x128xf32>
    %3 = tpu.matmul %1, %2, %cst {dimension_numbers = #tpu.dot_dimension_numbers<[1], [0], [0], [1], [0, 0, 1, 1], [], []>} : vector<8x128xbf16>, vector<128x128xbf16>, vector<8x128xf32> -> vector<8x128xf32>
    %c0_3 = arith.constant 0 : index
    %c0_4 = arith.constant 0 : index
    %4 = vector.load %arg3[%c0_3, %c0_4] : memref<1x128xf32, #tpu.memory_space<vmem>>, vector<1x128xf32>
    %5 = vector.broadcast %4 : vector<1x128xf32> to vector<8x128xf32>
    %6 = arith.addf %3, %5 : vector<8x128xf32>
    %cst_5 = arith.constant 0.000000e+00 : f32
    %7 = vector.broadcast %cst_5 : f32 to vector<8x128xf32>
    %8 = arith.maximumf %6, %7 : vector<8x128xf32>
    %9 = arith.truncf %8 : vector<8x128xf32> to vector<8x128xbf16>
    %c0_6 = arith.constant 0 : index
    %c0_7 = arith.constant 0 : index
    %10 = vector.load %arg4[%c0_6, %c0_7] : memref<128x128xbf16, #tpu.memory_space<vmem>>, vector<128x128xbf16>
    %cst_8 = arith.constant dense<0.000000e+00> : vector<8x128xf32>
    %11 = tpu.matmul %9, %10, %cst_8 {dimension_numbers = #tpu.dot_dimension_numbers<[1], [0], [0], [1], [0, 0, 1, 1], [], []>} : vector<8x128xbf16>, vector<128x128xbf16>, vector<8x128xf32> -> vector<8x128xf32>
    %12 = arith.addf %0, %11 : vector<8x128xf32>
    %c0_9 = arith.constant 0 : index
    %c0_10 = arith.constant 0 : index
    %13 = vector.load %arg5[%c0_9, %c0_10] : memref<1x128xf32, #tpu.memory_space<vmem>>, vector<1x128xf32>
    %14 = vector.broadcast %13 : vector<1x128xf32> to vector<8x128xf32>
    %15 = arith.addf %12, %14 : vector<8x128xf32>
    %c0_11 = arith.constant 0 : index
    %c0_12 = arith.constant 0 : index
    %16 = vector.load %arg6[%c0_11, %c0_12] : memref<8x128xf32, #tpu.memory_space<vmem>>, vector<8x128xf32>
    tpu.vector_store %arg6[%c0_11, %c0_12], %15 {strides = array<i32>} : memref<8x128xf32, #tpu.memory_space<vmem>>, vector<8x128xf32>,
    return
  }
  func.func @transform_0(%arg0: i32) -> (i32, i32) {
    %c0_i32 = arith.constant 0 : i32
    %c0_i32_0 = arith.constant 0 : i32
    return %arg0, %c0_i32 : i32, i32
  }
  func.func @transform_1(%arg0: i32) -> (i32, i32) {
    %c0_i32 = arith.constant 0 : i32
    %c0_i32_0 = arith.constant 0 : i32
    %c0_i32_1 = arith.constant 0 : i32
    return %c0_i32, %c0_i32_0 : i32, i32
  }
  func.func @transform_2(%arg0: i32) -> (i32, i32) {
    %c0_i32 = arith.constant 0 : i32
    %c0_i32_0 = arith.constant 0 : i32
    %c0_i32_1 = arith.constant 0 : i32
    return %c0_i32, %c0_i32_0 : i32, i32
  }
  func.func @transform_3(%arg0: i32) -> (i32, i32) {
    %c0_i32 = arith.constant 0 : i32
    %c0_i32_0 = arith.constant 0 : i32
    %c0_i32_1 = arith.constant 0 : i32
    return %c0_i32, %c0_i32_0 : i32, i32
  }
  func.func @transform_4(%arg0: i32) -> (i32, i32) {
    %c0_i32 = arith.constant 0 : i32
    %c0_i32_0 = arith.constant 0 : i32
    %c0_i32_1 = arith.constant 0 : i32
    return %c0_i32, %c0_i32_0 : i32, i32
  }
  func.func @transform_5(%arg0: i32) -> (i32, i32) {
    %c0_i32 = arith.constant 0 : i32
    %c0_i32_0 = arith.constant 0 : i32
    return %arg0, %c0_i32 : i32, i32
  }
}

</mosaic_0001>

<bundles_post_ra>
// kernel: tpu_custom_call.1
= control target key start
LH: loop header
LB: loop body
LE: loop exit
PB: predicated region body
PF: predicated region fallthrough
CT: control target
= control target key end

     0   :  { %10 = vsyncpa [#allocation3], 0  ;;  %s598_s0 = inlined_call_operand.hbm [shape: f32[8,128], index: 0, kind: input, shape index: {}]   ;;  %s599_s1 = inlined_call_operand.hbm [shape: bf16[128,128], index: 1, kind: input, shape index: {}]   ;;  %s600_s2 = inlined_call_operand.vmem [shape: f32[1,128], index: 2, kind: input, shape index: {}]   ;;  %s601_s3 = inlined_call_operand.hbm [shape: bf16[128,128], index: 3, kind: input, shape index: {}]   ;;  %s602_s4 = inlined_call_operand.vmem [shape: f32[1,128], index: 4, kind: input, shape index: {}]   ;;  %s603_s5 = inlined_call_operand.hbm [shape: f32[8,128], index: 5, kind: output, shape index: {}]  }
   0x1   :  { %11 = vsyncpa [#allocation6], 0 }
   0x2   :  { %12 = vsyncpa [#allocation4], 0  ;;  %s500_s18 = smov [#allocation5]   ;;  %s406_s22 = scalar_lea.hbm %s599_s1, 1024 }
   0x3   :  { %s28_s19 = sshll.u32 %s500_s18, 4  ;;  %p407_p0 = scmp.ne.s32.totalorder %s599_s1, %s406_s22  ;;  %s29_s19 = int_to_ptr.vmem [resolvable:$true] %s28_s19 }
   0x4   :  { %p410_p1 = scmp.lt.u32.totalorder %s406_s22, %s599_s1 }
   0x6   :  { %p412_p2 = pnand %p410_p1, %p407_p0 }
   0x8   :  { %415 = shalt.err (!%p412_p2)
}
   0x9   :  { %s416_s27 = scalar_lea.vmem %s29_s19, 1024  ;;  %p421_p4 = scmp.lt.s32.totalorder %s29_s19, %s29_s19 }
   0xa   :  { %p417_p3 = scmp.ne.s32.totalorder %s29_s19, %s416_s27  ;;  %p422_p5 = scmp.lt.s32.totalorder %s416_s27, %s416_s27 }
   0xc   :  { %p423_p6 = por %p422_p5, %p421_p4 }
   0xe   :  { %p424_p7 = pnand %p423_p6, %p417_p3 }
  0x10   :  { %427 = shalt.err (!%p424_p7)
}
  0x11   :  { %s501_s28 = smov 64   ;;  %s502_s29 = smov 4  }
  0x12   :  { %34 = dma.hbm_to_vmem [thread:$0]  %s599_s1, 1024, %s29_s19, [#allocation6], %s501_s28, %s501_s28, %s502_s29  }
  0x13   :  { %s503_s7 = smov [#allocation2]   ;;  %s504_s9 = smov [#allocation7]  }
  0x14   :  { %s19_s8 = sshll.u32 %s503_s7, 4  ;;  %s42_s10 = sshll.u32 %s504_s9, 4  ;;  %s20_s8 = int_to_ptr.vmem [resolvable:$true] %s19_s8  ;;  %s43_s10 = int_to_ptr.vmem [resolvable:$true] %s42_s10 }
  0x15   :  { %s428_s13 = scalar_lea.hbm %s598_s0, 128 }
  0x16   :  { %p429_p8 = scmp.ne.s32.totalorder %s598_s0, %s428_s13  ;;  %p432_p9 = scmp.lt.u32.totalorder %s428_s13, %s598_s0 }
  0x18   :  { %p434_p10 = pnand %p432_p9, %p429_p8 }
  0x1a   :  { %437 = shalt.err (!%p434_p10)
}
  0x1b   :  { %s438_s1 = scalar_lea.vmem %s20_s8, 128  ;;  %p443_p12 = scmp.lt.s32.totalorder %s20_s8, %s20_s8 }
  0x1c   :  { %p439_p11 = scmp.ne.s32.totalorder %s20_s8, %s438_s1  ;;  %p444_p13 = scmp.lt.s32.totalorder %s438_s1, %s438_s1 }
  0x1e   :  { %p445_p0 = por %p444_p13, %p443_p12 }
  0x20   :  { %p446_p1 = pnand %p445_p0, %p439_p11 }
  0x22   :  { %449 = shalt.err (!%p446_p1)
}
  0x23   :  { %22 = dma.hbm_to_vmem [thread:$0]  %s598_s0, 128, %s20_s8, [#allocation3]  }
  0x24   :  { %s450_s22 = scalar_lea.hbm %s601_s3, 1024 }
  0x25   :  { %p451_p2 = scmp.ne.s32.totalorder %s601_s3, %s450_s22  ;;  %p454_p3 = scmp.lt.u32.totalorder %s450_s22, %s601_s3 }
  0x27   :  { %p456_p4 = pnand %p454_p3, %p451_p2 }
  0x29   :  { %459 = shalt.err (!%p456_p4)
}
  0x2a   :  { %s460_s27 = scalar_lea.vmem %s43_s10, 1024  ;;  %p465_p6 = scmp.lt.s32.totalorder %s43_s10, %s43_s10 }
  0x2b   :  { %p461_p5 = scmp.ne.s32.totalorder %s43_s10, %s460_s27  ;;  %p466_p7 = scmp.lt.s32.totalorder %s460_s27, %s460_s27 }
  0x2d   :  { %p467_p8 = por %p466_p7, %p465_p6 }
  0x2f   :  { %p468_p9 = pnand %p467_p8, %p461_p5 }
  0x31   :  { %471 = shalt.err (!%p468_p9)
}
  0x32   :  { %48 = dma.hbm_to_vmem [thread:$0]  %s601_s3, 1024, %s43_s10, [#allocation6], %s501_s28, %s501_s28, %s502_s29  }
  0x33   :  { %494 = dma.done.wait [#allocation3], 128  }
  0x34   :  { %495 = vsyncadd [#allocation3], 4294967168 }
  0x35   :  { %496 = dma.done.wait [#allocation6], 2048  }
  0x36   :  { %497 = vsyncadd [#allocation6], 4294965248  ;;  %v505_v0 = vmov 0.0   ;;  %vm506_vm0 = vmmov 0   ;;  %v390_v1 = vld [vmem:[#allocation5] sm:$0xff]   ;;  %v391_v2 = vld [vmem:[#allocation5 + $0x8] sm:$0xff]  }
  0x37   :  { %342 = vmatprep.subr.bf16.mxu0 %v505_v0  ;;  %358 = vmatprep.mubr.msk.bf16.mxu0 %vm506_vm0, %v505_v0  ;;  %v392_v3 = vld [vmem:[#allocation5 + $0x10] sm:$0xff]   ;;  %v398_v4 = vld [vmem:[#allocation7] sm:$0xff]   ;;  %v393_v5 = vld [vmem:[#allocation5 + $0x18] sm:$0xff]   ;;  %s507_s7 = smov [#allocation8]  }
  0x38   :  { %362 = vmatprep.subr.bf16.mxu1 %v505_v0  ;;  %378 = vmatprep.mubr.msk.bf16.mxu1 %vm506_vm0, %v505_v0  ;;  %v399_v6 = vld [vmem:[#allocation7 + $0x8] sm:$0xff]   ;;  %v394_v7 = vld [vmem:[#allocation5 + $0x20] sm:$0xff]   ;;  %v400_v8 = vld [vmem:[#allocation7 + $0x10] sm:$0xff]   ;;  %s296_s8 = sshll.u32 %s507_s7, 4  ;;  %s297_s8 = int_to_ptr.vmem [resolvable:$true] %s296_s8 }
  0x39   :  { %343 = vmatpush3.bf16.msra.mxu0 %v390_v1  ;;  %363 = vmatpush3.bf16.msra.mxu1 %v398_v4  ;;  %v395_v9 = vld [vmem:[#allocation5 + $0x28] sm:$0xff]   ;;  %v401_v10 = vld [vmem:[#allocation7 + $0x18] sm:$0xff]   ;;  %v396_v11 = vld [vmem:[#allocation5 + $0x30] sm:$0xff]   ;;  %p477_p11 = scmp.lt.s32.totalorder %s297_s8, %s297_s8 }
  0x3a   :  { %344 = vmatprep.subr.bf16.mxu0 %v505_v0  ;;  %364 = vmatprep.subr.bf16.mxu1 %v505_v0  ;;  %v402_v12 = vld [vmem:[#allocation7 + $0x20] sm:$0xff]   ;;  %v397_v13 = vld [vmem:[#allocation5 + $0x38] sm:$0xff]   ;;  %v403_v15 = vld [vmem:[#allocation7 + $0x28] sm:$0xff]  }
  0x3b   :  { %v61_v14 = vld [vmem:[#allocation2] sm:$0xff]  ;;  %v404_v17 = vld [vmem:[#allocation7 + $0x30] sm:$0xff]  }
  0x3c   :  { %v62_v16 = vpack.c.bf16 %v61_v14, %v61_v14  ;;  %v405_v18 = vld [vmem:[#allocation7 + $0x38] sm:$0xff]  }
  0x3d   :  { %345 = vmatpush3.bf16.msra.mxu0 %v391_v2  ;;  %365 = vmatpush3.bf16.msra.mxu1 %v399_v6  ;;  %v306_v19 = vld [vmem:[%s600_s2] ss:$0 sm:$0xff]  ;;  %s472_s2 = scalar_lea.vmem %s297_s8, 128 }
  0x3e   :  { %346 = vmatprep.subr.bf16.mxu0 %v505_v0  ;;  %366 = vmatprep.subr.bf16.mxu1 %v505_v0  ;;  %v323_v28 = vld [vmem:[%s602_s4] ss:$0 sm:$0xff]  ;;  %p473_p10 = scmp.ne.s32.totalorder %s297_s8, %s472_s2  ;;  %p478_p12 = scmp.lt.s32.totalorder %s472_s2, %s472_s2 }
  0x40   :  { %p479_p13 = por %p478_p12, %p477_p11 }
  0x41   :  { %347 = vmatpush3.bf16.msra.mxu0 %v392_v3  ;;  %367 = vmatpush3.bf16.msra.mxu1 %v400_v8 }
  0x42   :  { %348 = vmatprep.subr.bf16.mxu0 %v505_v0  ;;  %368 = vmatprep.subr.bf16.mxu1 %v505_v0  ;;  %p480_p0 = pnand %p479_p13, %p473_p10 }
  0x45   :  { %349 = vmatpush3.bf16.msra.mxu0 %v393_v5  ;;  %369 = vmatpush3.bf16.msra.mxu1 %v401_v10 }
  0x46   :  { %350 = vmatprep.subr.bf16.mxu0 %v505_v0  ;;  %370 = vmatprep.subr.bf16.mxu1 %v505_v0 }
  0x49   :  { %351 = vmatpush3.bf16.msra.mxu0 %v394_v7  ;;  %371 = vmatpush3.bf16.msra.mxu1 %v402_v12 }
  0x4a   :  { %352 = vmatprep.subr.bf16.mxu0 %v505_v0  ;;  %372 = vmatprep.subr.bf16.mxu1 %v505_v0 }
  0x4d   :  { %353 = vmatpush3.bf16.msra.mxu0 %v395_v9  ;;  %373 = vmatpush3.bf16.msra.mxu1 %v403_v15 }
  0x4e   :  { %354 = vmatprep.subr.bf16.mxu0 %v505_v0  ;;  %374 = vmatprep.subr.bf16.mxu1 %v505_v0 }
  0x51   :  { %355 = vmatpush3.bf16.msra.mxu0 %v396_v11  ;;  %375 = vmatpush3.bf16.msra.mxu1 %v404_v17 }
  0x52   :  { %356 = vmatprep.subr.bf16.mxu0 %v505_v0  ;;  %376 = vmatprep.subr.bf16.mxu1 %v505_v0 }
  0x55   :  { %357 = vmatpush3.bf16.msra.mxu0 %v397_v13  ;;  %377 = vmatpush3.bf16.msra.mxu1 %v405_v18 }
  0x58   :  { %359 = vmatmul.mubr.bf16.vlgmr.msra.gmra.mrb[0].mxu0 %v62_v16 }
 0x12b   :  { %v168_v20 = vpop.f32.mrb[0].mxu0 }
 0x12c   :  { %v169_v21 = vadd.f32 %v306_v19, %v168_v20  ;;  %v360_v22 = vpop.f32.mrb[1].mxu0 }
 0x12d   :  { %v171_v23 = vpop.f32.mrb[2].mxu0 }
 0x12e   :  { %v174_v24 = vmax.f32 %v169_v21, 0.0  ;;  %v361_v25 = vpop.f32.mrb[3].mxu0 }
 0x130   :  { %v175_v26 = vpack.c.bf16 %v174_v24, %v174_v24 }
 0x132   :  { %379 = vmatmul.mubr.bf16.vlgmr.msra.gmra.mrb[0].mxu1 %v175_v26 }
 0x205   :  { %v274_v27 = vpop.f32.mrb[0].mxu1 }
 0x206   :  { %v280_v29 = vadd.f32 %v274_v27, %v61_v14  ;;  %v380_v30 = vpop.f32.mrb[1].mxu1 }
 0x207   :  { %v277_v31 = vpop.f32.mrb[2].mxu1 }
 0x208   :  { %v288_v32 = vadd.f32 %v323_v28, %v280_v29  ;;  %v381_v33 = vpop.f32.mrb[3].mxu1 }
 0x20a   :  { %289 = vst [vmem:[#allocation8] sm:$0xff] %v288_v32 }
 0x20b   :  { %483 = shalt.err (!%p480_p0)
}
 0x20c   :  { %s484_s4 = scalar_lea.hbm %s603_s5, 128 }
 0x20d   :  { %p485_p1 = scmp.ne.s32.totalorder %s603_s5, %s484_s4  ;;  %p488_p2 = scmp.lt.u32.totalorder %s484_s4, %s603_s5 }
 0x20f   :  { %p490_p3 = pnand %p488_p2, %p485_p1 }
 0x211   :  { %493 = shalt.err (!%p490_p3)
}
 0x212   :  { %299 = dma.vmem_to_hbm [thread:$0]  %s297_s8, 128, %s603_s5, [#allocation4]  }
 0x213   :  { %498 = dma.done.wait [#allocation4], 128  }
 0x214   :  { %499 = vsyncadd [#allocation4], 4294967168 }
 0x215   :  { %303 = vsyncpa [#allocation3], 1 }
 0x216   :  { %304 = vsyncpa [#allocation6], 1 }
 0x217   :  { %305 = vsyncpa [#allocation4], 1 }

// kernel: tpu_custom_call.1
= control target key start
LH: loop header
LB: loop body
LE: loop exit
PB: predicated region body
PF: predicated region fallthrough
CT: control target
= control target key end

     0   :  { %10 = vsyncpa [#allocation3], 0  ;;  %s598_s0 = inlined_call_operand.hbm [shape: f32[8,128], index: 0, kind: input, shape index: {}]   ;;  %s599_s1 = inlined_call_operand.hbm [shape: bf16[128,128], index: 1, kind: input, shape index: {}]   ;;  %s600_s2 = inlined_call_operand.vmem [shape: f32[1,128], index: 2, kind: input, shape index: {}]   ;;  %s601_s3 = inlined_call_operand.hbm [shape: bf16[128,128], index: 3, kind: input, shape index: {}]   ;;  %s602_s4 = inlined_call_operand.vmem [shape: f32[1,128], index: 4, kind: input, shape index: {}]   ;;  %s603_s5 = inlined_call_operand.hbm [shape: f32[8,128], index: 5, kind: output, shape index: {}]  }
   0x1   :  { %11 = vsyncpa [#allocation6], 0 }
   0x2   :  { %12 = vsyncpa [#allocation4], 0  ;;  %s500_s18 = smov [#allocation5]   ;;  %s406_s22 = scalar_lea.hbm %s599_s1, 1024 }
   0x3   :  { %s28_s19 = sshll.u32 %s500_s18, 4  ;;  %p407_p0 = scmp.ne.s32.totalorder %s599_s1, %s406_s22  ;;  %s29_s19 = int_to_ptr.vmem [resolvable:$true] %s28_s19 }
   0x4   :  { %p410_p1 = scmp.lt.u32.totalorder %s406_s22, %s599_s1 }
   0x6   :  { %p412_p2 = pnand %p410_p1, %p407_p0 }
   0x8   :  { %415 = shalt.err (!%p412_p2)
}
   0x9   :  { %s416_s27 = scalar_lea.vmem %s29_s19, 1024  ;;  %p421_p4 = scmp.lt.s32.totalorder %s29_s19, %s29_s19 }
   0xa   :  { %p417_p3 = scmp.ne.s32.totalorder %s29_s19, %s416_s27  ;;  %p422_p5 = scmp.lt.s32.totalorder %s416_s27, %s416_s27 }
   0xc   :  { %p423_p6 = por %p422_p5, %p421_p4 }
   0xe   :  { %p424_p7 = pnand %p423_p6, %p417_p3 }
  0x10   :  { %427 = shalt.err (!%p424_p7)
}
  0x11   :  { %s501_s28 = smov 64   ;;  %s502_s29 = smov 4  }
  0x12   :  { %34 = dma.hbm_to_vmem [thread:$0]  %s599_s1, 1024, %s29_s19, [#allocation6], %s501_s28, %s501_s28, %s502_s29  }
  0x13   :  { %s503_s7 = smov [#allocation2]   ;;  %s504_s9 = smov [#allocation7]  }
  0x14   :  { %s19_s8 = sshll.u32 %s503_s7, 4  ;;  %s42_s10 = sshll.u32 %s504_s9, 4  ;;  %s20_s8 = int_to_ptr.vmem [resolvable:$true] %s19_s8  ;;  %s43_s10 = int_to_ptr.vmem [resolvable:$true] %s42_s10 }
  0x15   :  { %s428_s13 = scalar_lea.hbm %s598_s0, 128 }
  0x16   :  { %p429_p8 = scmp.ne.s32.totalorder %s598_s0, %s428_s13  ;;  %p432_p9 = scmp.lt.u32.totalorder %s428_s13, %s598_s0 }
  0x18   :  { %p434_p10 = pnand %p432_p9, %p429_p8 }
  0x1a   :  { %437 = shalt.err (!%p434_p10)
}
  0x1b   :  { %s438_s1 = scalar_lea.vmem %s20_s8, 128  ;;  %p443_p12 = scmp.lt.s32.totalorder %s20_s8, %s20_s8 }
  0x1c   :  { %p439_p11 = scmp.ne.s32.totalorder %s20_s8, %s438_s1  ;;  %p444_p13 = scmp.lt.s32.totalorder %s438_s1, %s438_s1 }
  0x1e   :  { %p445_p0 = por %p444_p13, %p443_p12 }
  0x20   :  { %p446_p1 = pnand %p445_p0, %p439_p11 }
  0x22   :  { %449 = shalt.err (!%p446_p1)
}
  0x23   :  { %22 = dma.hbm_to_vmem [thread:$0]  %s598_s0, 128, %s20_s8, [#allocation3]  }
  0x24   :  { %s450_s22 = scalar_lea.hbm %s601_s3, 1024 }
  0x25   :  { %p451_p2 = scmp.ne.s32.totalorder %s601_s3, %s450_s22  ;;  %p454_p3 = scmp.lt.u32.totalorder %s450_s22, %s601_s3 }
  0x27   :  { %p456_p4 = pnand %p454_p3, %p451_p2 }
  0x29   :  { %459 = shalt.err (!%p456_p4)
}
  0x2a   :  { %s460_s27 = scalar_lea.vmem %s43_s10, 1024  ;;  %p465_p6 = scmp.lt.s32.totalorder %s43_s10, %s43_s10 }
  0x2b   :  { %p461_p5 = scmp.ne.s32.totalorder %s43_s10, %s460_s27  ;;  %p466_p7 = scmp.lt.s32.totalorder %s460_s27, %s460_s27 }
  0x2d   :  { %p467_p8 = por %p466_p7, %p465_p6 }
  0x2f   :  { %p468_p9 = pnand %p467_p8, %p461_p5 }
  0x31   :  { %471 = shalt.err (!%p468_p9)
}
  0x32   :  { %48 = dma.hbm_to_vmem [thread:$0]  %s601_s3, 1024, %s43_s10, [#allocation6], %s501_s28, %s501_s28, %s502_s29  }
  0x33   :  { %494 = dma.done.wait [#allocation3], 128  }
  0x34   :  { %495 = vsyncadd [#allocation3], 4294967168 }
  0x35   :  { %496 = dma.done.wait [#allocation6], 2048  }
  0x36   :  { %497 = vsyncadd [#allocation6], 4294965248  ;;  %v505_v0 = vmov 0.0   ;;  %vm506_vm0 = vmmov 0   ;;  %v390_v1 = vld [vmem:[#allocation5] sm:$0xff]   ;;  %v391_v2 = vld [vmem:[#allocation5 + $0x8] sm:$0xff]  }
  0x37   :  { %342 = vmatprep.subr.bf16.mxu0 %v505_v0  ;;  %358 = vmatprep.mubr.msk.bf16.mxu0 %vm506_vm0, %v505_v0  ;;  %v392_v3 = vld [vmem:[#allocation5 + $0x10] sm:$0xff]   ;;  %v398_v4 = vld [vmem:[#allocation7] sm:$0xff]   ;;  %v393_v5 = vld [vmem:[#allocation5 + $0x18] sm:$0xff]   ;;  %s507_s7 = smov [#allocation8]  }
  0x38   :  { %362 = vmatprep.subr.bf16.mxu1 %v505_v0  ;;  %378 = vmatprep.mubr.msk.bf16.mxu1 %vm506_vm0, %v505_v0  ;;  %v399_v6 = vld [vmem:[#allocation7 + $0x8] sm:$0xff]   ;;  %v394_v7 = vld [vmem:[#allocation5 + $0x20] sm:$0xff]   ;;  %v400_v8 = vld [vmem:[#allocation7 + $0x10] sm:$0xff]   ;;  %s296_s8 = sshll.u32 %s507_s7, 4  ;;  %s297_s8 = int_to_ptr.vmem [resolvable:$true] %s296_s8 }
  0x39   :  { %343 = vmatpush3.bf16.msra.mxu0 %v390_v1  ;;  %363 = vmatpush3.bf16.msra.mxu1 %v398_v4  ;;  %v395_v9 = vld [vmem:[#allocation5 + $0x28] sm:$0xff]   ;;  %v401_v10 = vld [vmem:[#allocation7 + $0x18] sm:$0xff]   ;;  %v396_v11 = vld [vmem:[#allocation5 + $0x30] sm:$0xff]   ;;  %p477_p11 = scmp.lt.s32.totalorder %s297_s8, %s297_s8 }
  0x3a   :  { %344 = vmatprep.subr.bf16.mxu0 %v505_v0  ;;  %364 = vmatprep.subr.bf16.mxu1 %v505_v0  ;;  %v402_v12 = vld [vmem:[#allocation7 + $0x20] sm:$0xff]   ;;  %v397_v13 = vld [vmem:[#allocation5 + $0x38] sm:$0xff]   ;;  %v403_v15 = vld [vmem:[#allocation7 + $0x28] sm:$0xff]  }
  0x3b   :  { %v61_v14 = vld [vmem:[#allocation2] sm:$0xff]  ;;  %v404_v17 = vld [vmem:[#allocation7 + $0x30] sm:$0xff]  }
  0x3c   :  { %v62_v16 = vpack.c.bf16 %v61_v14, %v61_v14  ;;  %v405_v18 = vld [vmem:[#allocation7 + $0x38] sm:$0xff]  }
  0x3d   :  { %345 = vmatpush3.bf16.msra.mxu0 %v391_v2  ;;  %365 = vmatpush3.bf16.msra.mxu1 %v399_v6  ;;  %v306_v19 = vld [vmem:[%s600_s2] ss:$0 sm:$0xff]  ;;  %s472_s2 = scalar_lea.vmem %s297_s8, 128 }
  0x3e   :  { %346 = vmatprep.subr.bf16.mxu0 %v505_v0  ;;  %366 = vmatprep.subr.bf16.mxu1 %v505_v0  ;;  %v323_v28 = vld [vmem:[%s602_s4] ss:$0 sm:$0xff]  ;;  %p473_p10 = scmp.ne.s32.totalorder %s297_s8, %s472_s2  ;;  %p478_p12 = scmp.lt.s32.totalorder %s472_s2, %s472_s2 }
  0x40   :  { %p479_p13 = por %p478_p12, %p477_p11 }
  0x41   :  { %347 = vmatpush3.bf16.msra.mxu0 %v392_v3  ;;  %367 = vmatpush3.bf16.msra.mxu1 %v400_v8 }
  0x42   :  { %348 = vmatprep.subr.bf16.mxu0 %v505_v0  ;;  %368 = vmatprep.subr.bf16.mxu1 %v505_v0  ;;  %p480_p0 = pnand %p479_p13, %p473_p10 }
  0x45   :  { %349 = vmatpush3.bf16.msra.mxu0 %v393_v5  ;;  %369 = vmatpush3.bf16.msra.mxu1 %v401_v10 }
  0x46   :  { %350 = vmatprep.subr.bf16.mxu0 %v505_v0  ;;  %370 = vmatprep.subr.bf16.mxu1 %v505_v0 }
  0x49   :  { %351 = vmatpush3.bf16.msra.mxu0 %v394_v7  ;;  %371 = vmatpush3.bf16.msra.mxu1 %v402_v12 }
  0x4a   :  { %352 = vmatprep.subr.bf16.mxu0 %v505_v0  ;;  %372 = vmatprep.subr.bf16.mxu1 %v505_v0 }
  0x4d   :  { %353 = vmatpush3.bf16.msra.mxu0 %v395_v9  ;;  %373 = vmatpush3.bf16.msra.mxu1 %v403_v15 }
  0x4e   :  { %354 = vmatprep.subr.bf16.mxu0 %v505_v0  ;;  %374 = vmatprep.subr.bf16.mxu1 %v505_v0 }
  0x51   :  { %355 = vmatpush3.bf16.msra.mxu0 %v396_v11  ;;  %375 = vmatpush3.bf16.msra.mxu1 %v404_v17 }
  0x52   :  { %356 = vmatprep.subr.bf16.mxu0 %v505_v0  ;;  %376 = vmatprep.subr.bf16.mxu1 %v505_v0 }
  0x55   :  { %357 = vmatpush3.bf16.msra.mxu0 %v397_v13  ;;  %377 = vmatpush3.bf16.msra.mxu1 %v405_v18 }
  0x58   :  { %359 = vmatmul.mubr.bf16.vlgmr.msra.gmra.mrb[0].mxu0 %v62_v16 }
 0x12b   :  { %v168_v20 = vpop.f32.mrb[0].mxu0 }
 0x12c   :  { %v169_v21 = vadd.f32 %v306_v19, %v168_v20  ;;  %v360_v22 = vpop.f32.mrb[1].mxu0 }
 0x12d   :  { %v171_v23 = vpop.f32.mrb[2].mxu0 }
 0x12e   :  { %v174_v24 = vmax.f32 %v169_v21, 0.0  ;;  %v361_v25 = vpop.f32.mrb[3].mxu0 }
 0x130   :  { %v175_v26 = vpack.c.bf16 %v174_v24, %v174_v24 }
 0x132   :  { %379 = vmatmul.mubr.bf16.vlgmr.msra.gmra.mrb[0].mxu1 %v175_v26 }
 0x205   :  { %v274_v27 = vpop.f32.mrb[0].mxu1 }
 0x206   :  { %v280_v29 = vadd.f32 %v274_v27, %v61_v14  ;;  %v380_v30 = vpop.f32.mrb[1].mxu1 }
 0x207   :  { %v277_v31 = vpop.f32.mrb[2].mxu1 }
 0x208   :  { %v288_v32 = vadd.f32 %v323_v28, %v280_v29  ;;  %v381_v33 = vpop.f32.mrb[3].mxu1 }
 0x20a   :  { %289 = vst [vmem:[#allocation8] sm:$0xff] %v288_v32 }
 0x20b   :  { %483 = shalt.err (!%p480_p0)
}
 0x20c   :  { %s484_s4 = scalar_lea.hbm %s603_s5, 128 }
 0x20d   :  { %p485_p1 = scmp.ne.s32.totalorder %s603_s5, %s484_s4  ;;  %p488_p2 = scmp.lt.u32.totalorder %s484_s4, %s603_s5 }
 0x20f   :  { %p490_p3 = pnand %p488_p2, %p485_p1 }
 0x211   :  { %493 = shalt.err (!%p490_p3)
}
 0x212   :  { %299 = dma.vmem_to_hbm [thread:$0]  %s297_s8, 128, %s603_s5, [#allocation4]  }
 0x213   :  { %498 = dma.done.wait [#allocation4], 128  }
 0x214   :  { %499 = vsyncadd [#allocation4], 4294967168 }
 0x215   :  { %303 = vsyncpa [#allocation3], 1 }
 0x216   :  { %304 = vsyncpa [#allocation6], 1 }
 0x217   :  { %305 = vsyncpa [#allocation4], 1 }

</bundles_post_ra>
